<compile_context>
chip_gen: v5e
topology: v5e:2x2
jax: 0.10.0
libtpu: 0.0.40
codegen_flags: <defaults>
</compile_context>

<pallas_src>
import jax
import jax.numpy as jnp
import numpy as np
from jax.experimental import pallas as pl
from jax.experimental.pallas import tpu as pltpu


# ---------------------------------------------------------------------------
# MaxPool2d(2, 2)
# ---------------------------------------------------------------------------

def _maxpool_kernel(x_ref, o_ref):
    # x_ref: (4, R, 128) -- axis 0 enumerates the 4 elements of each 2x2 window,
    # the (R, 128) slab enumerates output positions in (n, c, ho, wo) row-major order.
    # Lane dim = 128 -> dense, unmasked vector stores.
    m01 = jnp.maximum(x_ref[0], x_ref[1])
    m23 = jnp.maximum(x_ref[2], x_ref[3])
    o_ref[...] = jnp.maximum(m01, m23)


def maxpool2x2(x):
    """2x2 stride-2 max-pool of NCHW input.  Returns (N, C, H//2, W//2)."""
    N, C, H, W = x.shape
    Ho, Wo = H // 2, W // 2
    P = N * C * Ho * Wo
    assert P % 128 == 0
    R = P // 128

    # Layout plumbing: (N,C,H,W) -> (r, s, n, c, ho, wo) -> (4, R, 128).
    # Single cheap host transpose (<1 MB) that buys a lane-dense, single-step kernel.
    xp = jnp.transpose(x.reshape(N, C, Ho, 2, Wo, 2), (3, 5, 0, 1, 2, 4)).reshape(4, R, 128)

    out = pl.pallas_call(
        _maxpool_kernel,
        out_shape=jax.ShapeDtypeStruct((R, 128), x.dtype),
        grid_spec=pltpu.PrefetchScalarGridSpec(
            num_scalar_prefetch=0,
            grid=(1,),                                   # whole problem in one step (<1 MB)
            in_specs=[pl.BlockSpec((4, R, 128), lambda i: (0, 0, 0))],
            out_specs=pl.BlockSpec((R, 128), lambda i: (0, 0)),
        ),
        compiler_params=pltpu.CompilerParams(
            dimension_semantics=("arbitrary",)),
    )(xp)
    # Flat order of `out` is (n, c, ho, wo) row-major -> free reshape back to NCHW.
    return out.reshape(N, C, Ho, Wo)


# ---------------------------------------------------------------------------
# Linear (28800 -> 1600), K-tiled MXU matmul with f32 accumulator
# ---------------------------------------------------------------------------

def _linear_kernel(x_ref, w_ref, b_ref, o_ref, acc_ref):
    k = pl.program_id(1)

    @pl.when(k == 0)
    def _():
        acc_ref[...] = jnp.zeros_like(acc_ref)

    acc_ref[...] += jnp.dot(x_ref[...], w_ref[0],
                            preferred_element_type=jnp.float32)

    @pl.when(k == pl.num_programs(1) - 1)
    def _():
        o_ref[0] = (acc_ref[...] + b_ref[0]).astype(o_ref.dtype)


def prepare_linear_params(w, b, *, n_out_splits=2, weight_dtype=jnp.float32):
    """One-time (parameter-load time) conversion of PyTorch-layout Linear params.

    w: (Nout, K) -> (J, K, Nout//J)   K-major, split along Nout (no per-call transpose).
    b: (Nout,)   -> (J, 1, Nout//J)
    weight_dtype=jnp.bfloat16 halves the HBM-bound weight stream if reduced precision is
    acceptable (also cast the activations); default f32 matches the PyTorch module exactly.
    """
    n_out, K = w.shape
    assert n_out % n_out_splits == 0
    tn = n_out // n_out_splits
    w_prep = jnp.transpose(w.reshape(n_out_splits, tn, K), (0, 2, 1)).astype(weight_dtype)
    b_prep = b.reshape(n_out_splits, 1, tn).astype(jnp.float32)
    return w_prep, b_prep


def linear(x_flat, w_prep, b_prep, *, tk=3200):
    N, K = x_flat.shape
    J, Kw, tn = w_prep.shape
    assert Kw == K and K % tk == 0 and tk % 128 == 0
    n_out = J * tn

    out = pl.pallas_call(
        _linear_kernel,
        out_shape=jax.ShapeDtypeStruct((J, N, tn), x_flat.dtype),
        grid_spec=pltpu.PrefetchScalarGridSpec(
            num_scalar_prefetch=0,
            grid=(J, K // tk),                           # (parallel Nout-split, K reduction)
            in_specs=[pl.BlockSpec((N, tk), lambda j, k: (0, k)),
                      pl.BlockSpec((1, tk, tn), lambda j, k: (j, k, 0)),
                      pl.BlockSpec((1, 1, tn), lambda j, k: (j, 0, 0))],
            out_specs=pl.BlockSpec((1, N, tn), lambda j, k: (j, 0, 0)),
            scratch_shapes=[pltpu.VMEM((N, tn), jnp.float32)],
        ),
        compiler_params=pltpu.CompilerParams(
            dimension_semantics=("parallel", "arbitrary"),
            vmem_limit_bytes=40 * 1024 * 1024),          # ~21 MB actually used; headroom on v7x
    )(x_flat, w_prep, b_prep)
    # (J, N, tn) -> (N, J*tn): tiny (N * n_out * 4 B) relayout.
    return jnp.transpose(out, (1, 0, 2)).reshape(N, n_out)


# ---------------------------------------------------------------------------
# Forward
# ---------------------------------------------------------------------------

def readout_net_c2_forward(x, params):
    pooled = maxpool2x2(x)                        # (N, 32, 30, 30)
    pool_flat = pooled.reshape(x.shape[0], -1)    # (N, 28800), matches .view(-1, 32*30*30)
    fc1 = linear(pool_flat, params["fc1_w"], params["fc1_b"])
    return {"out": fc1}


if __name__ == "__main__":
    key = jax.random.PRNGKey(0)
    kx, kw, kb = jax.random.split(key, 3)

    N, C, H, W = 2, 32, 60, 60            # forward implies C=32, pooled 30x30
    fan_in = 32 * 30 * 30                 # 28800
    n_out = 1600

    x = jax.random.normal(kx, (N, C, H, W), dtype=jnp.float32)
    bound = 1.0 / np.sqrt(fan_in)         # PyTorch-style Linear init range
    fc1_w = jax.random.uniform(kw, (n_out, fan_in), jnp.float32, -bound, bound)
    fc1_b = jax.random.uniform(kb, (n_out,), jnp.float32, -bound, bound)

    # One-time parameter-load-time conversion (no per-forward transpose).
    w_prep, b_prep = prepare_linear_params(fc1_w, fc1_b)
    params = {"fc1_w": w_prep, "fc1_b": b_prep}

    feats = readout_net_c2_forward(x, params)
    out = jax.block_until_ready(feats["out"])
    assert out.shape == (N, n_out)

    # Pure-numpy reference (loose tolerance: MXU f32 matmul default precision).
    x_np = np.asarray(x)
    pooled_ref = x_np.reshape(N, C, 30, 2, 30, 2).max(axis=(3, 5))
    flat_ref = pooled_ref.reshape(N, -1)
    ref = flat_ref @ np.asarray(fc1_w).T + np.asarray(fc1_b)
    np.testing.assert_allclose(np.asarray(out), ref, rtol=5e-2, atol=5e-2)

    print("KERNEL_OK")
</pallas_src>

<mosaic_0001>
module attributes {stable_mosaic.version = 11 : i64} {
  func.func @_maxpool_kernel(%arg0: i32, %arg1: memref<4x450x128xf32, #tpu.memory_space<vmem>>, %arg2: memref<450x128xf32, #tpu.memory_space<vmem>>) attributes {dimension_semantics = [#tpu.dimension_semantics<arbitrary>], iteration_bounds = array<i64: 1>, scalar_prefetch = 0 : i64, scratch_operands = 0 : i64, tpu.core_type = #tpu.core_type<tc>, window_params = [{pipeline_mode = #tpu.pipeline_mode<synchronous>, transform_indices = @transform_0, window_bounds = array<i64: 4, 450, 128>}, {pipeline_mode = #tpu.pipeline_mode<synchronous>, transform_indices = @transform_1, window_bounds = array<i64: 450, 128>}]} {
    %c0 = arith.constant 0 : index
    %c0_0 = arith.constant 0 : index
    %c0_1 = arith.constant 0 : index
    %0 = vector.load %arg1[%c0, %c0_0, %c0_1] : memref<4x450x128xf32, #tpu.memory_space<vmem>>, vector<1x450x128xf32>
    %1 = vector.shape_cast %0 : vector<1x450x128xf32> to vector<450x128xf32>
    %c1 = arith.constant 1 : index
    %c0_2 = arith.constant 0 : index
    %c0_3 = arith.constant 0 : index
    %2 = vector.load %arg1[%c1, %c0_2, %c0_3] : memref<4x450x128xf32, #tpu.memory_space<vmem>>, vector<1x450x128xf32>
    %3 = vector.shape_cast %2 : vector<1x450x128xf32> to vector<450x128xf32>
    %4 = arith.maximumf %1, %3 : vector<450x128xf32>
    %c2 = arith.constant 2 : index
    %c0_4 = arith.constant 0 : index
    %c0_5 = arith.constant 0 : index
    %5 = vector.load %arg1[%c2, %c0_4, %c0_5] : memref<4x450x128xf32, #tpu.memory_space<vmem>>, vector<1x450x128xf32>
    %6 = vector.shape_cast %5 : vector<1x450x128xf32> to vector<450x128xf32>
    %c3 = arith.constant 3 : index
    %c0_6 = arith.constant 0 : index
    %c0_7 = arith.constant 0 : index
    %7 = vector.load %arg1[%c3, %c0_6, %c0_7] : memref<4x450x128xf32, #tpu.memory_space<vmem>>, vector<1x450x128xf32>
    %8 = vector.shape_cast %7 : vector<1x450x128xf32> to vector<450x128xf32>
    %9 = arith.maximumf %6, %8 : vector<450x128xf32>
    %10 = arith.maximumf %4, %9 : vector<450x128xf32>
    %c0_8 = arith.constant 0 : index
    %c0_9 = arith.constant 0 : index
    %11 = vector.load %arg2[%c0_8, %c0_9] : memref<450x128xf32, #tpu.memory_space<vmem>>, vector<450x128xf32>
    tpu.vector_store %arg2[%c0_8, %c0_9], %10 {strides = array<i32>} : memref<450x128xf32, #tpu.memory_space<vmem>>, vector<450x128xf32>,
    return
  }
  func.func @transform_0(%arg0: i32) -> (i32, i32, i32) {
    %c0_i32 = arith.constant 0 : i32
    %c0_i32_0 = arith.constant 0 : i32
    %c0_i32_1 = arith.constant 0 : i32
    %c0_i32_2 = arith.constant 0 : i32
    return %c0_i32, %c0_i32_0, %c0_i32_1 : i32, i32, i32
  }
  func.func @transform_1(%arg0: i32) -> (i32, i32) {
    %c0_i32 = arith.constant 0 : i32
    %c0_i32_0 = arith.constant 0 : i32
    %c0_i32_1 = arith.constant 0 : i32
    return %c0_i32, %c0_i32_0 : i32, i32
  }
}

</mosaic_0001>

<bundles_post_ra>
// kernel: tpu_custom_call.1
= control target key start
LH: loop header
LB: loop body
LE: loop exit
PB: predicated region body
PF: predicated region fallthrough
CT: control target
= control target key end

     0   :  { %s686_s28 = smov [#allocation2]   ;;  %s1386_s0 = inlined_call_operand.vmem [shape: f32[4,450,128], index: 0, kind: input, shape index: {}]   ;;  %s1387_s1 = inlined_call_operand.hbm [shape: f32[450,128], index: 1, kind: output, shape index: {}]  }
   0x1   :  { %v9_v0 = vld [vmem:[%s1386_s0] sm:$0xff]  ;;  %v486_v1 = vld [vmem:[%s1386_s0 + $0x1c8] sm:$0xff]  ;;  %v543_v2 = vld [vmem:[%s1386_s0 + $0x390] sm:$0xff]  ;;  %s474_s23 = sshll.u32 %s1387_s1, 4  ;;  %s472_s29 = sshll.u32 %s686_s28, 4  ;;  %s473_s29 = int_to_ptr.vmem [resolvable:$true] %s472_s29  ;;  %s475_s23 = int_to_ptr.hbm [resolvable:$true] %s474_s23 }
   0x2   :  { %v124_v3 = vmax.f32 %v9_v0, %v486_v1  ;;  %v600_v4 = vld [vmem:[%s1386_s0 + $0x558] sm:$0xff]  ;;  %v10_v5 = vld [vmem:[%s1386_s0 + $0x8] sm:$0xff]  ;;  %v487_v6 = vld [vmem:[%s1386_s0 + $0x1d0] sm:$0xff] }
   0x3   :  { %v297_v7 = vmax.f32 %v543_v2, %v600_v4  ;;  %v125_v8 = vmax.f32 %v10_v5, %v487_v6  ;;  %v544_v9 = vld [vmem:[%s1386_s0 + $0x398] sm:$0xff]  ;;  %v601_v10 = vld [vmem:[%s1386_s0 + $0x560] sm:$0xff]  ;;  %v11_v11 = vld [vmem:[%s1386_s0 + $0x10] sm:$0xff] }
   0x4   :  { %v298_v12 = vmax.f32 %v544_v9, %v601_v10  ;;  %v488_v13 = vld [vmem:[%s1386_s0 + $0x1d8] sm:$0xff]  ;;  %v545_v14 = vld [vmem:[%s1386_s0 + $0x3a0] sm:$0xff]  ;;  %v602_v15 = vld [vmem:[%s1386_s0 + $0x568] sm:$0xff] }
   0x5   :  { %v354_v16 = vmax.f32 %v124_v3, %v297_v7  ;;  %v126_v17 = vmax.f32 %v11_v11, %v488_v13  ;;  %v299_v18 = vmax.f32 %v545_v14, %v602_v15  ;;  %v12_v19 = vld [vmem:[%s1386_s0 + $0x18] sm:$0xff]  ;;  %v489_v20 = vld [vmem:[%s1386_s0 + $0x1e0] sm:$0xff]  ;;  %v546_v21 = vld [vmem:[%s1386_s0 + $0x3a8] sm:$0xff] }
   0x6   :  { %v355_v22 = vmax.f32 %v125_v8, %v298_v12  ;;  %v127_v23 = vmax.f32 %v12_v19, %v489_v20  ;;  %v603_v24 = vld [vmem:[%s1386_s0 + $0x570] sm:$0xff]  ;;  %v13_v25 = vld [vmem:[%s1386_s0 + $0x20] sm:$0xff]  ;;  %v490_v26 = vld [vmem:[%s1386_s0 + $0x1e8] sm:$0xff] }
   0x7   :  { %411 = vst [vmem:[#allocation2] sm:$0xff] %v354_v16  ;;  %v356_v27 = vmax.f32 %v126_v17, %v299_v18  ;;  %v300_v28 = vmax.f32 %v546_v21, %v603_v24  ;;  %v128_v29 = vmax.f32 %v13_v25, %v490_v26  ;;  %v547_v30 = vld [vmem:[%s1386_s0 + $0x3b0] sm:$0xff]  ;;  %v604_v31 = vld [vmem:[%s1386_s0 + $0x578] sm:$0xff]  ;;  %v14_v32 = vld [vmem:[%s1386_s0 + $0x28] sm:$0xff] }
   0x8   :  { %412 = vst [vmem:[#allocation2 + $0x8] sm:$0xff] %v355_v22  ;;  %v301_v33 = vmax.f32 %v547_v30, %v604_v31  ;;  %v491_v34 = vld [vmem:[%s1386_s0 + $0x1f0] sm:$0xff]  ;;  %v548_v35 = vld [vmem:[%s1386_s0 + $0x3b8] sm:$0xff]  ;;  %v605_v36 = vld [vmem:[%s1386_s0 + $0x580] sm:$0xff] }
   0x9   :  { %413 = vst [vmem:[#allocation2 + $0x10] sm:$0xff] %v356_v27  ;;  %v357_v37 = vmax.f32 %v127_v23, %v300_v28  ;;  %v129_v38 = vmax.f32 %v14_v32, %v491_v34  ;;  %v302_v39 = vmax.f32 %v548_v35, %v605_v36  ;;  %v15_v40 = vld [vmem:[%s1386_s0 + $0x30] sm:$0xff]  ;;  %v492_v41 = vld [vmem:[%s1386_s0 + $0x1f8] sm:$0xff]  ;;  %v549_v42 = vld [vmem:[%s1386_s0 + $0x3c0] sm:$0xff] }
   0xa   :  { %v358_v43 = vmax.f32 %v128_v29, %v301_v33  ;;  %v130_v44 = vmax.f32 %v15_v40, %v492_v41  ;;  %v606_v45 = vld [vmem:[%s1386_s0 + $0x588] sm:$0xff]  ;;  %v16_v46 = vld [vmem:[%s1386_s0 + $0x38] sm:$0xff]  ;;  %v493_v47 = vld [vmem:[%s1386_s0 + $0x200] sm:$0xff] }
   0xb   :  { %414 = vst [vmem:[#allocation2 + $0x18] sm:$0xff] %v357_v37  ;;  %v359_v48 = vmax.f32 %v129_v38, %v302_v39  ;;  %v303_v49 = vmax.f32 %v549_v42, %v606_v45  ;;  %v131_v50 = vmax.f32 %v16_v46, %v493_v47  ;;  %v550_v51 = vld [vmem:[%s1386_s0 + $0x3c8] sm:$0xff]  ;;  %v607_v52 = vld [vmem:[%s1386_s0 + $0x590] sm:$0xff]  ;;  %v17_v53 = vld [vmem:[%s1386_s0 + $0x40] sm:$0xff] }
   0xc   :  { %415 = vst [vmem:[#allocation2 + $0x20] sm:$0xff] %v358_v43  ;;  %v304_v54 = vmax.f32 %v550_v51, %v607_v52  ;;  %v494_v55 = vld [vmem:[%s1386_s0 + $0x208] sm:$0xff]  ;;  %v551_v56 = vld [vmem:[%s1386_s0 + $0x3d0] sm:$0xff]  ;;  %v608_v57 = vld [vmem:[%s1386_s0 + $0x598] sm:$0xff] }
   0xd   :  { %416 = vst [vmem:[#allocation2 + $0x28] sm:$0xff] %v359_v48  ;;  %v360_v58 = vmax.f32 %v130_v44, %v303_v49  ;;  %v132_v59 = vmax.f32 %v17_v53, %v494_v55  ;;  %v305_v60 = vmax.f32 %v551_v56, %v608_v57  ;;  %v18_v61 = vld [vmem:[%s1386_s0 + $0x48] sm:$0xff]  ;;  %v495_v62 = vld [vmem:[%s1386_s0 + $0x210] sm:$0xff]  ;;  %v552_v63 = vld [vmem:[%s1386_s0 + $0x3d8] sm:$0xff] }
   0xe   :  { %v361_v0 = vmax.f32 %v131_v50, %v304_v54  ;;  %v133_v1 = vmax.f32 %v18_v61, %v495_v62  ;;  %v609_v2 = vld [vmem:[%s1386_s0 + $0x5a0] sm:$0xff]  ;;  %v19_v3 = vld [vmem:[%s1386_s0 + $0x50] sm:$0xff]  ;;  %v496_v4 = vld [vmem:[%s1386_s0 + $0x218] sm:$0xff] }
   0xf   :  { %417 = vst [vmem:[#allocation2 + $0x30] sm:$0xff] %v360_v58  ;;  %v362_v5 = vmax.f32 %v132_v59, %v305_v60  ;;  %v306_v6 = vmax.f32 %v552_v63, %v609_v2  ;;  %v134_v7 = vmax.f32 %v19_v3, %v496_v4  ;;  %v553_v8 = vld [vmem:[%s1386_s0 + $0x3e0] sm:$0xff]  ;;  %v610_v9 = vld [vmem:[%s1386_s0 + $0x5a8] sm:$0xff]  ;;  %v20_v10 = vld [vmem:[%s1386_s0 + $0x58] sm:$0xff] }
  0x10   :  { %418 = vst [vmem:[#allocation2 + $0x38] sm:$0xff] %v361_v0  ;;  %v307_v11 = vmax.f32 %v553_v8, %v610_v9  ;;  %v497_v12 = vld [vmem:[%s1386_s0 + $0x220] sm:$0xff]  ;;  %v554_v13 = vld [vmem:[%s1386_s0 + $0x3e8] sm:$0xff]  ;;  %v611_v14 = vld [vmem:[%s1386_s0 + $0x5b0] sm:$0xff] }
  0x11   :  { %419 = vst [vmem:[#allocation2 + $0x40] sm:$0xff] %v362_v5  ;;  %v363_v15 = vmax.f32 %v133_v1, %v306_v6  ;;  %v135_v16 = vmax.f32 %v20_v10, %v497_v12  ;;  %v308_v17 = vmax.f32 %v554_v13, %v611_v14  ;;  %v21_v18 = vld [vmem:[%s1386_s0 + $0x60] sm:$0xff]  ;;  %v498_v19 = vld [vmem:[%s1386_s0 + $0x228] sm:$0xff]  ;;  %v555_v20 = vld [vmem:[%s1386_s0 + $0x3f0] sm:$0xff] }
  0x12   :  { %v364_v21 = vmax.f32 %v134_v7, %v307_v11  ;;  %v136_v22 = vmax.f32 %v21_v18, %v498_v19  ;;  %v612_v23 = vld [vmem:[%s1386_s0 + $0x5b8] sm:$0xff]  ;;  %v22_v24 = vld [vmem:[%s1386_s0 + $0x68] sm:$0xff]  ;;  %v499_v25 = vld [vmem:[%s1386_s0 + $0x230] sm:$0xff] }
  0x13   :  { %420 = vst [vmem:[#allocation2 + $0x48] sm:$0xff] %v363_v15  ;;  %v365_v26 = vmax.f32 %v135_v16, %v308_v17  ;;  %v309_v27 = vmax.f32 %v555_v20, %v612_v23  ;;  %v137_v28 = vmax.f32 %v22_v24, %v499_v25  ;;  %v556_v29 = vld [vmem:[%s1386_s0 + $0x3f8] sm:$0xff]  ;;  %v613_v30 = vld [vmem:[%s1386_s0 + $0x5c0] sm:$0xff]  ;;  %v23_v31 = vld [vmem:[%s1386_s0 + $0x70] sm:$0xff] }
  0x14   :  { %421 = vst [vmem:[#allocation2 + $0x50] sm:$0xff] %v364_v21  ;;  %v310_v32 = vmax.f32 %v556_v29, %v613_v30  ;;  %v500_v33 = vld [vmem:[%s1386_s0 + $0x238] sm:$0xff]  ;;  %v557_v34 = vld [vmem:[%s1386_s0 + $0x400] sm:$0xff]  ;;  %v614_v35 = vld [vmem:[%s1386_s0 + $0x5c8] sm:$0xff] }
  0x15   :  { %422 = vst [vmem:[#allocation2 + $0x58] sm:$0xff] %v365_v26  ;;  %v366_v36 = vmax.f32 %v136_v22, %v309_v27  ;;  %v138_v37 = vmax.f32 %v23_v31, %v500_v33  ;;  %v311_v38 = vmax.f32 %v557_v34, %v614_v35  ;;  %v24_v39 = vld [vmem:[%s1386_s0 + $0x78] sm:$0xff]  ;;  %v501_v40 = vld [vmem:[%s1386_s0 + $0x240] sm:$0xff]  ;;  %v558_v41 = vld [vmem:[%s1386_s0 + $0x408] sm:$0xff] }
  0x16   :  { %v367_v42 = vmax.f32 %v137_v28, %v310_v32  ;;  %v139_v43 = vmax.f32 %v24_v39, %v501_v40  ;;  %v615_v44 = vld [vmem:[%s1386_s0 + $0x5d0] sm:$0xff]  ;;  %v25_v45 = vld [vmem:[%s1386_s0 + $0x80] sm:$0xff]  ;;  %v502_v46 = vld [vmem:[%s1386_s0 + $0x248] sm:$0xff] }
  0x17   :  { %423 = vst [vmem:[#allocation2 + $0x60] sm:$0xff] %v366_v36  ;;  %v368_v47 = vmax.f32 %v138_v37, %v311_v38  ;;  %v312_v48 = vmax.f32 %v558_v41, %v615_v44  ;;  %v140_v49 = vmax.f32 %v25_v45, %v502_v46  ;;  %v559_v50 = vld [vmem:[%s1386_s0 + $0x410] sm:$0xff]  ;;  %v616_v51 = vld [vmem:[%s1386_s0 + $0x5d8] sm:$0xff]  ;;  %v26_v52 = vld [vmem:[%s1386_s0 + $0x88] sm:$0xff] }
  0x18   :  { %424 = vst [vmem:[#allocation2 + $0x68] sm:$0xff] %v367_v42  ;;  %v313_v53 = vmax.f32 %v559_v50, %v616_v51  ;;  %v503_v54 = vld [vmem:[%s1386_s0 + $0x250] sm:$0xff]  ;;  %v560_v55 = vld [vmem:[%s1386_s0 + $0x418] sm:$0xff]  ;;  %v617_v56 = vld [vmem:[%s1386_s0 + $0x5e0] sm:$0xff] }
  0x19   :  { %425 = vst [vmem:[#allocation2 + $0x70] sm:$0xff] %v368_v47  ;;  %v369_v57 = vmax.f32 %v139_v43, %v312_v48  ;;  %v141_v58 = vmax.f32 %v26_v52, %v503_v54  ;;  %v314_v59 = vmax.f32 %v560_v55, %v617_v56  ;;  %v27_v60 = vld [vmem:[%s1386_s0 + $0x90] sm:$0xff]  ;;  %v504_v61 = vld [vmem:[%s1386_s0 + $0x258] sm:$0xff]  ;;  %v561_v62 = vld [vmem:[%s1386_s0 + $0x420] sm:$0xff] }
  0x1a   :  { %v370_v63 = vmax.f32 %v140_v49, %v313_v53  ;;  %v142_v0 = vmax.f32 %v27_v60, %v504_v61  ;;  %v618_v1 = vld [vmem:[%s1386_s0 + $0x5e8] sm:$0xff]  ;;  %v28_v2 = vld [vmem:[%s1386_s0 + $0x98] sm:$0xff]  ;;  %v505_v3 = vld [vmem:[%s1386_s0 + $0x260] sm:$0xff] }
  0x1b   :  { %426 = vst [vmem:[#allocation2 + $0x78] sm:$0xff] %v369_v57  ;;  %v371_v4 = vmax.f32 %v141_v58, %v314_v59  ;;  %v315_v5 = vmax.f32 %v561_v62, %v618_v1  ;;  %v143_v6 = vmax.f32 %v28_v2, %v505_v3  ;;  %v562_v7 = vld [vmem:[%s1386_s0 + $0x428] sm:$0xff]  ;;  %v619_v8 = vld [vmem:[%s1386_s0 + $0x5f0] sm:$0xff]  ;;  %v29_v9 = vld [vmem:[%s1386_s0 + $0xa0] sm:$0xff] }
  0x1c   :  { %427 = vst [vmem:[#allocation2 + $0x80] sm:$0xff] %v370_v63  ;;  %v316_v10 = vmax.f32 %v562_v7, %v619_v8  ;;  %v506_v11 = vld [vmem:[%s1386_s0 + $0x268] sm:$0xff]  ;;  %v563_v12 = vld [vmem:[%s1386_s0 + $0x430] sm:$0xff]  ;;  %v620_v13 = vld [vmem:[%s1386_s0 + $0x5f8] sm:$0xff] }
  0x1d   :  { %428 = vst [vmem:[#allocation2 + $0x88] sm:$0xff] %v371_v4  ;;  %v372_v14 = vmax.f32 %v142_v0, %v315_v5  ;;  %v144_v15 = vmax.f32 %v29_v9, %v506_v11  ;;  %v317_v16 = vmax.f32 %v563_v12, %v620_v13  ;;  %v30_v17 = vld [vmem:[%s1386_s0 + $0xa8] sm:$0xff]  ;;  %v507_v18 = vld [vmem:[%s1386_s0 + $0x270] sm:$0xff]  ;;  %v564_v19 = vld [vmem:[%s1386_s0 + $0x438] sm:$0xff] }
  0x1e   :  { %v373_v20 = vmax.f32 %v143_v6, %v316_v10  ;;  %v145_v21 = vmax.f32 %v30_v17, %v507_v18  ;;  %v621_v22 = vld [vmem:[%s1386_s0 + $0x600] sm:$0xff]  ;;  %v31_v23 = vld [vmem:[%s1386_s0 + $0xb0] sm:$0xff]  ;;  %v508_v24 = vld [vmem:[%s1386_s0 + $0x278] sm:$0xff] }
  0x1f   :  { %429 = vst [vmem:[#allocation2 + $0x90] sm:$0xff] %v372_v14  ;;  %v374_v25 = vmax.f32 %v144_v15, %v317_v16  ;;  %v318_v26 = vmax.f32 %v564_v19, %v621_v22  ;;  %v146_v27 = vmax.f32 %v31_v23, %v508_v24  ;;  %v565_v28 = vld [vmem:[%s1386_s0 + $0x440] sm:$0xff]  ;;  %v622_v29 = vld [vmem:[%s1386_s0 + $0x608] sm:$0xff]  ;;  %v32_v30 = vld [vmem:[%s1386_s0 + $0xb8] sm:$0xff] }
  0x20   :  { %430 = vst [vmem:[#allocation2 + $0x98] sm:$0xff] %v373_v20  ;;  %v319_v31 = vmax.f32 %v565_v28, %v622_v29  ;;  %v509_v32 = vld [vmem:[%s1386_s0 + $0x280] sm:$0xff]  ;;  %v566_v33 = vld [vmem:[%s1386_s0 + $0x448] sm:$0xff]  ;;  %v623_v34 = vld [vmem:[%s1386_s0 + $0x610] sm:$0xff] }
  0x21   :  { %431 = vst [vmem:[#allocation2 + $0xa0] sm:$0xff] %v374_v25  ;;  %v375_v35 = vmax.f32 %v145_v21, %v318_v26  ;;  %v147_v36 = vmax.f32 %v32_v30, %v509_v32  ;;  %v320_v37 = vmax.f32 %v566_v33, %v623_v34  ;;  %v33_v38 = vld [vmem:[%s1386_s0 + $0xc0] sm:$0xff]  ;;  %v510_v39 = vld [vmem:[%s1386_s0 + $0x288] sm:$0xff]  ;;  %v567_v40 = vld [vmem:[%s1386_s0 + $0x450] sm:$0xff] }
  0x22   :  { %v376_v41 = vmax.f32 %v146_v27, %v319_v31  ;;  %v148_v42 = vmax.f32 %v33_v38, %v510_v39  ;;  %v624_v43 = vld [vmem:[%s1386_s0 + $0x618] sm:$0xff]  ;;  %v34_v44 = vld [vmem:[%s1386_s0 + $0xc8] sm:$0xff]  ;;  %v511_v45 = vld [vmem:[%s1386_s0 + $0x290] sm:$0xff] }
  0x23   :  { %432 = vst [vmem:[#allocation2 + $0xa8] sm:$0xff] %v375_v35  ;;  %v377_v46 = vmax.f32 %v147_v36, %v320_v37  ;;  %v321_v47 = vmax.f32 %v567_v40, %v624_v43  ;;  %v149_v48 = vmax.f32 %v34_v44, %v511_v45  ;;  %v568_v49 = vld [vmem:[%s1386_s0 + $0x458] sm:$0xff]  ;;  %v625_v50 = vld [vmem:[%s1386_s0 + $0x620] sm:$0xff]  ;;  %v35_v51 = vld [vmem:[%s1386_s0 + $0xd0] sm:$0xff] }
  0x24   :  { %433 = vst [vmem:[#allocation2 + $0xb0] sm:$0xff] %v376_v41  ;;  %v322_v52 = vmax.f32 %v568_v49, %v625_v50  ;;  %v512_v53 = vld [vmem:[%s1386_s0 + $0x298] sm:$0xff]  ;;  %v569_v54 = vld [vmem:[%s1386_s0 + $0x460] sm:$0xff]  ;;  %v626_v55 = vld [vmem:[%s1386_s0 + $0x628] sm:$0xff] }
  0x25   :  { %434 = vst [vmem:[#allocation2 + $0xb8] sm:$0xff] %v377_v46  ;;  %v378_v56 = vmax.f32 %v148_v42, %v321_v47  ;;  %v150_v57 = vmax.f32 %v35_v51, %v512_v53  ;;  %v323_v58 = vmax.f32 %v569_v54, %v626_v55  ;;  %v36_v59 = vld [vmem:[%s1386_s0 + $0xd8] sm:$0xff]  ;;  %v513_v60 = vld [vmem:[%s1386_s0 + $0x2a0] sm:$0xff]  ;;  %v570_v61 = vld [vmem:[%s1386_s0 + $0x468] sm:$0xff] }
  0x26   :  { %v379_v62 = vmax.f32 %v149_v48, %v322_v52  ;;  %v151_v63 = vmax.f32 %v36_v59, %v513_v60  ;;  %v627_v0 = vld [vmem:[%s1386_s0 + $0x630] sm:$0xff]  ;;  %v37_v1 = vld [vmem:[%s1386_s0 + $0xe0] sm:$0xff]  ;;  %v514_v2 = vld [vmem:[%s1386_s0 + $0x2a8] sm:$0xff] }
  0x27   :  { %435 = vst [vmem:[#allocation2 + $0xc0] sm:$0xff] %v378_v56  ;;  %v380_v3 = vmax.f32 %v150_v57, %v323_v58  ;;  %v324_v4 = vmax.f32 %v570_v61, %v627_v0  ;;  %v152_v5 = vmax.f32 %v37_v1, %v514_v2  ;;  %v571_v6 = vld [vmem:[%s1386_s0 + $0x470] sm:$0xff]  ;;  %v628_v7 = vld [vmem:[%s1386_s0 + $0x638] sm:$0xff]  ;;  %v38_v8 = vld [vmem:[%s1386_s0 + $0xe8] sm:$0xff] }
  0x28   :  { %436 = vst [vmem:[#allocation2 + $0xc8] sm:$0xff] %v379_v62  ;;  %v325_v9 = vmax.f32 %v571_v6, %v628_v7  ;;  %v515_v10 = vld [vmem:[%s1386_s0 + $0x2b0] sm:$0xff]  ;;  %v572_v11 = vld [vmem:[%s1386_s0 + $0x478] sm:$0xff]  ;;  %v629_v12 = vld [vmem:[%s1386_s0 + $0x640] sm:$0xff] }
  0x29   :  { %437 = vst [vmem:[#allocation2 + $0xd0] sm:$0xff] %v380_v3  ;;  %v381_v13 = vmax.f32 %v151_v63, %v324_v4  ;;  %v153_v14 = vmax.f32 %v38_v8, %v515_v10  ;;  %v326_v15 = vmax.f32 %v572_v11, %v629_v12  ;;  %v39_v16 = vld [vmem:[%s1386_s0 + $0xf0] sm:$0xff]  ;;  %v516_v17 = vld [vmem:[%s1386_s0 + $0x2b8] sm:$0xff]  ;;  %v573_v18 = vld [vmem:[%s1386_s0 + $0x480] sm:$0xff] }
  0x2a   :  { %v382_v19 = vmax.f32 %v152_v5, %v325_v9  ;;  %v154_v20 = vmax.f32 %v39_v16, %v516_v17  ;;  %v630_v21 = vld [vmem:[%s1386_s0 + $0x648] sm:$0xff]  ;;  %v40_v22 = vld [vmem:[%s1386_s0 + $0xf8] sm:$0xff]  ;;  %v517_v23 = vld [vmem:[%s1386_s0 + $0x2c0] sm:$0xff] }
  0x2b   :  { %438 = vst [vmem:[#allocation2 + $0xd8] sm:$0xff] %v381_v13  ;;  %v383_v24 = vmax.f32 %v153_v14, %v326_v15  ;;  %v327_v25 = vmax.f32 %v573_v18, %v630_v21  ;;  %v155_v26 = vmax.f32 %v40_v22, %v517_v23  ;;  %v574_v27 = vld [vmem:[%s1386_s0 + $0x488] sm:$0xff]  ;;  %v631_v28 = vld [vmem:[%s1386_s0 + $0x650] sm:$0xff]  ;;  %v41_v29 = vld [vmem:[%s1386_s0 + $0x100] sm:$0xff] }
  0x2c   :  { %439 = vst [vmem:[#allocation2 + $0xe0] sm:$0xff] %v382_v19  ;;  %v328_v30 = vmax.f32 %v574_v27, %v631_v28  ;;  %v518_v31 = vld [vmem:[%s1386_s0 + $0x2c8] sm:$0xff]  ;;  %v575_v32 = vld [vmem:[%s1386_s0 + $0x490] sm:$0xff]  ;;  %v632_v33 = vld [vmem:[%s1386_s0 + $0x658] sm:$0xff] }
  0x2d   :  { %440 = vst [vmem:[#allocation2 + $0xe8] sm:$0xff] %v383_v24  ;;  %v384_v34 = vmax.f32 %v154_v20, %v327_v25  ;;  %v156_v35 = vmax.f32 %v41_v29, %v518_v31  ;;  %v329_v36 = vmax.f32 %v575_v32, %v632_v33  ;;  %v42_v37 = vld [vmem:[%s1386_s0 + $0x108] sm:$0xff]  ;;  %v519_v38 = vld [vmem:[%s1386_s0 + $0x2d0] sm:$0xff]  ;;  %v576_v39 = vld [vmem:[%s1386_s0 + $0x498] sm:$0xff] }
  0x2e   :  { %v385_v40 = vmax.f32 %v155_v26, %v328_v30  ;;  %v157_v41 = vmax.f32 %v42_v37, %v519_v38  ;;  %v633_v42 = vld [vmem:[%s1386_s0 + $0x660] sm:$0xff]  ;;  %v43_v43 = vld [vmem:[%s1386_s0 + $0x110] sm:$0xff]  ;;  %v520_v44 = vld [vmem:[%s1386_s0 + $0x2d8] sm:$0xff] }
  0x2f   :  { %441 = vst [vmem:[#allocation2 + $0xf0] sm:$0xff] %v384_v34  ;;  %v386_v45 = vmax.f32 %v156_v35, %v329_v36  ;;  %v330_v46 = vmax.f32 %v576_v39, %v633_v42  ;;  %v158_v47 = vmax.f32 %v43_v43, %v520_v44  ;;  %v577_v48 = vld [vmem:[%s1386_s0 + $0x4a0] sm:$0xff]  ;;  %v634_v49 = vld [vmem:[%s1386_s0 + $0x668] sm:$0xff]  ;;  %v44_v50 = vld [vmem:[%s1386_s0 + $0x118] sm:$0xff] }
  0x30   :  { %442 = vst [vmem:[#allocation2 + $0xf8] sm:$0xff] %v385_v40  ;;  %v331_v51 = vmax.f32 %v577_v48, %v634_v49  ;;  %v521_v52 = vld [vmem:[%s1386_s0 + $0x2e0] sm:$0xff]  ;;  %v578_v53 = vld [vmem:[%s1386_s0 + $0x4a8] sm:$0xff]  ;;  %v635_v54 = vld [vmem:[%s1386_s0 + $0x670] sm:$0xff] }
  0x31   :  { %443 = vst [vmem:[#allocation2 + $0x100] sm:$0xff] %v386_v45  ;;  %v387_v55 = vmax.f32 %v157_v41, %v330_v46  ;;  %v159_v56 = vmax.f32 %v44_v50, %v521_v52  ;;  %v332_v57 = vmax.f32 %v578_v53, %v635_v54  ;;  %v45_v58 = vld [vmem:[%s1386_s0 + $0x120] sm:$0xff]  ;;  %v522_v59 = vld [vmem:[%s1386_s0 + $0x2e8] sm:$0xff]  ;;  %v579_v60 = vld [vmem:[%s1386_s0 + $0x4b0] sm:$0xff] }
  0x32   :  { %v388_v61 = vmax.f32 %v158_v47, %v331_v51  ;;  %v160_v62 = vmax.f32 %v45_v58, %v522_v59  ;;  %v636_v63 = vld [vmem:[%s1386_s0 + $0x678] sm:$0xff]  ;;  %v46_v0 = vld [vmem:[%s1386_s0 + $0x128] sm:$0xff]  ;;  %v523_v1 = vld [vmem:[%s1386_s0 + $0x2f0] sm:$0xff] }
  0x33   :  { %444 = vst [vmem:[#allocation2 + $0x108] sm:$0xff] %v387_v55  ;;  %v389_v2 = vmax.f32 %v159_v56, %v332_v57  ;;  %v333_v3 = vmax.f32 %v579_v60, %v636_v63  ;;  %v161_v4 = vmax.f32 %v46_v0, %v523_v1  ;;  %v580_v5 = vld [vmem:[%s1386_s0 + $0x4b8] sm:$0xff]  ;;  %v637_v6 = vld [vmem:[%s1386_s0 + $0x680] sm:$0xff]  ;;  %v47_v7 = vld [vmem:[%s1386_s0 + $0x130] sm:$0xff] }
  0x34   :  { %445 = vst [vmem:[#allocation2 + $0x110] sm:$0xff] %v388_v61  ;;  %v334_v8 = vmax.f32 %v580_v5, %v637_v6  ;;  %v524_v9 = vld [vmem:[%s1386_s0 + $0x2f8] sm:$0xff]  ;;  %v581_v10 = vld [vmem:[%s1386_s0 + $0x4c0] sm:$0xff]  ;;  %v638_v11 = vld [vmem:[%s1386_s0 + $0x688] sm:$0xff] }
  0x35   :  { %446 = vst [vmem:[#allocation2 + $0x118] sm:$0xff] %v389_v2  ;;  %v390_v12 = vmax.f32 %v160_v62, %v333_v3  ;;  %v162_v13 = vmax.f32 %v47_v7, %v524_v9  ;;  %v335_v14 = vmax.f32 %v581_v10, %v638_v11  ;;  %v48_v15 = vld [vmem:[%s1386_s0 + $0x138] sm:$0xff]  ;;  %v525_v16 = vld [vmem:[%s1386_s0 + $0x300] sm:$0xff]  ;;  %v582_v17 = vld [vmem:[%s1386_s0 + $0x4c8] sm:$0xff] }
  0x36   :  { %v391_v18 = vmax.f32 %v161_v4, %v334_v8  ;;  %v163_v19 = vmax.f32 %v48_v15, %v525_v16  ;;  %v639_v20 = vld [vmem:[%s1386_s0 + $0x690] sm:$0xff]  ;;  %v49_v21 = vld [vmem:[%s1386_s0 + $0x140] sm:$0xff]  ;;  %v526_v22 = vld [vmem:[%s1386_s0 + $0x308] sm:$0xff] }
  0x37   :  { %447 = vst [vmem:[#allocation2 + $0x120] sm:$0xff] %v390_v12  ;;  %v392_v23 = vmax.f32 %v162_v13, %v335_v14  ;;  %v336_v24 = vmax.f32 %v582_v17, %v639_v20  ;;  %v164_v25 = vmax.f32 %v49_v21, %v526_v22  ;;  %v583_v26 = vld [vmem:[%s1386_s0 + $0x4d0] sm:$0xff]  ;;  %v640_v27 = vld [vmem:[%s1386_s0 + $0x698] sm:$0xff]  ;;  %v50_v28 = vld [vmem:[%s1386_s0 + $0x148] sm:$0xff] }
  0x38   :  { %448 = vst [vmem:[#allocation2 + $0x128] sm:$0xff] %v391_v18  ;;  %v337_v29 = vmax.f32 %v583_v26, %v640_v27  ;;  %v527_v30 = vld [vmem:[%s1386_s0 + $0x310] sm:$0xff]  ;;  %v584_v31 = vld [vmem:[%s1386_s0 + $0x4d8] sm:$0xff]  ;;  %v641_v32 = vld [vmem:[%s1386_s0 + $0x6a0] sm:$0xff] }
  0x39   :  { %449 = vst [vmem:[#allocation2 + $0x130] sm:$0xff] %v392_v23  ;;  %v393_v33 = vmax.f32 %v163_v19, %v336_v24  ;;  %v165_v34 = vmax.f32 %v50_v28, %v527_v30  ;;  %v338_v35 = vmax.f32 %v584_v31, %v641_v32  ;;  %v51_v36 = vld [vmem:[%s1386_s0 + $0x150] sm:$0xff]  ;;  %v528_v37 = vld [vmem:[%s1386_s0 + $0x318] sm:$0xff]  ;;  %v585_v38 = vld [vmem:[%s1386_s0 + $0x4e0] sm:$0xff] }
  0x3a   :  { %v394_v39 = vmax.f32 %v164_v25, %v337_v29  ;;  %v166_v40 = vmax.f32 %v51_v36, %v528_v37  ;;  %v642_v41 = vld [vmem:[%s1386_s0 + $0x6a8] sm:$0xff]  ;;  %v52_v42 = vld [vmem:[%s1386_s0 + $0x158] sm:$0xff]  ;;  %v529_v43 = vld [vmem:[%s1386_s0 + $0x320] sm:$0xff] }
  0x3b   :  { %450 = vst [vmem:[#allocation2 + $0x138] sm:$0xff] %v393_v33  ;;  %v395_v44 = vmax.f32 %v165_v34, %v338_v35  ;;  %v339_v45 = vmax.f32 %v585_v38, %v642_v41  ;;  %v167_v46 = vmax.f32 %v52_v42, %v529_v43  ;;  %v586_v47 = vld [vmem:[%s1386_s0 + $0x4e8] sm:$0xff]  ;;  %v643_v48 = vld [vmem:[%s1386_s0 + $0x6b0] sm:$0xff]  ;;  %v53_v49 = vld [vmem:[%s1386_s0 + $0x160] sm:$0xff] }
  0x3c   :  { %451 = vst [vmem:[#allocation2 + $0x140] sm:$0xff] %v394_v39  ;;  %v340_v50 = vmax.f32 %v586_v47, %v643_v48  ;;  %v530_v51 = vld [vmem:[%s1386_s0 + $0x328] sm:$0xff]  ;;  %v587_v52 = vld [vmem:[%s1386_s0 + $0x4f0] sm:$0xff]  ;;  %v644_v53 = vld [vmem:[%s1386_s0 + $0x6b8] sm:$0xff] }
  0x3d   :  { %452 = vst [vmem:[#allocation2 + $0x148] sm:$0xff] %v395_v44  ;;  %v396_v54 = vmax.f32 %v166_v40, %v339_v45  ;;  %v168_v55 = vmax.f32 %v53_v49, %v530_v51  ;;  %v341_v56 = vmax.f32 %v587_v52, %v644_v53  ;;  %v54_v57 = vld [vmem:[%s1386_s0 + $0x168] sm:$0xff]  ;;  %v531_v58 = vld [vmem:[%s1386_s0 + $0x330] sm:$0xff]  ;;  %v588_v59 = vld [vmem:[%s1386_s0 + $0x4f8] sm:$0xff] }
  0x3e   :  { %v397_v60 = vmax.f32 %v167_v46, %v340_v50  ;;  %v169_v61 = vmax.f32 %v54_v57, %v531_v58  ;;  %v645_v62 = vld [vmem:[%s1386_s0 + $0x6c0] sm:$0xff]  ;;  %v55_v63 = vld [vmem:[%s1386_s0 + $0x170] sm:$0xff]  ;;  %v532_v0 = vld [vmem:[%s1386_s0 + $0x338] sm:$0xff] }
  0x3f   :  { %453 = vst [vmem:[#allocation2 + $0x150] sm:$0xff] %v396_v54  ;;  %v398_v1 = vmax.f32 %v168_v55, %v341_v56  ;;  %v342_v2 = vmax.f32 %v588_v59, %v645_v62  ;;  %v170_v3 = vmax.f32 %v55_v63, %v532_v0  ;;  %v589_v4 = vld [vmem:[%s1386_s0 + $0x500] sm:$0xff]  ;;  %v646_v5 = vld [vmem:[%s1386_s0 + $0x6c8] sm:$0xff]  ;;  %v56_v6 = vld [vmem:[%s1386_s0 + $0x178] sm:$0xff] }
  0x40   :  { %454 = vst [vmem:[#allocation2 + $0x158] sm:$0xff] %v397_v60  ;;  %v343_v7 = vmax.f32 %v589_v4, %v646_v5  ;;  %v533_v8 = vld [vmem:[%s1386_s0 + $0x340] sm:$0xff]  ;;  %v590_v9 = vld [vmem:[%s1386_s0 + $0x508] sm:$0xff]  ;;  %v647_v10 = vld [vmem:[%s1386_s0 + $0x6d0] sm:$0xff] }
  0x41   :  { %455 = vst [vmem:[#allocation2 + $0x160] sm:$0xff] %v398_v1  ;;  %v399_v11 = vmax.f32 %v169_v61, %v342_v2  ;;  %v171_v12 = vmax.f32 %v56_v6, %v533_v8  ;;  %v344_v13 = vmax.f32 %v590_v9, %v647_v10  ;;  %v57_v14 = vld [vmem:[%s1386_s0 + $0x180] sm:$0xff]  ;;  %v534_v15 = vld [vmem:[%s1386_s0 + $0x348] sm:$0xff]  ;;  %v591_v16 = vld [vmem:[%s1386_s0 + $0x510] sm:$0xff] }
  0x42   :  { %v400_v17 = vmax.f32 %v170_v3, %v343_v7  ;;  %v172_v18 = vmax.f32 %v57_v14, %v534_v15  ;;  %v648_v19 = vld [vmem:[%s1386_s0 + $0x6d8] sm:$0xff]  ;;  %v58_v20 = vld [vmem:[%s1386_s0 + $0x188] sm:$0xff]  ;;  %v535_v21 = vld [vmem:[%s1386_s0 + $0x350] sm:$0xff] }
  0x43   :  { %456 = vst [vmem:[#allocation2 + $0x168] sm:$0xff] %v399_v11  ;;  %v401_v22 = vmax.f32 %v171_v12, %v344_v13  ;;  %v345_v23 = vmax.f32 %v591_v16, %v648_v19  ;;  %v173_v24 = vmax.f32 %v58_v20, %v535_v21  ;;  %v592_v25 = vld [vmem:[%s1386_s0 + $0x518] sm:$0xff]  ;;  %v649_v26 = vld [vmem:[%s1386_s0 + $0x6e0] sm:$0xff]  ;;  %v59_v27 = vld [vmem:[%s1386_s0 + $0x190] sm:$0xff] }
  0x44   :  { %457 = vst [vmem:[#allocation2 + $0x170] sm:$0xff] %v400_v17  ;;  %v346_v28 = vmax.f32 %v592_v25, %v649_v26  ;;  %v536_v29 = vld [vmem:[%s1386_s0 + $0x358] sm:$0xff]  ;;  %v593_v30 = vld [vmem:[%s1386_s0 + $0x520] sm:$0xff]  ;;  %v650_v31 = vld [vmem:[%s1386_s0 + $0x6e8] sm:$0xff] }
  0x45   :  { %458 = vst [vmem:[#allocation2 + $0x178] sm:$0xff] %v401_v22  ;;  %v402_v32 = vmax.f32 %v172_v18, %v345_v23  ;;  %v174_v33 = vmax.f32 %v59_v27, %v536_v29  ;;  %v347_v34 = vmax.f32 %v593_v30, %v650_v31  ;;  %v60_v35 = vld [vmem:[%s1386_s0 + $0x198] sm:$0xff]  ;;  %v537_v36 = vld [vmem:[%s1386_s0 + $0x360] sm:$0xff]  ;;  %v594_v37 = vld [vmem:[%s1386_s0 + $0x528] sm:$0xff] }
  0x46   :  { %v403_v38 = vmax.f32 %v173_v24, %v346_v28  ;;  %v175_v39 = vmax.f32 %v60_v35, %v537_v36  ;;  %v651_v40 = vld [vmem:[%s1386_s0 + $0x6f0] sm:$0xff]  ;;  %v61_v41 = vld [vmem:[%s1386_s0 + $0x1a0] sm:$0xff]  ;;  %v538_v42 = vld [vmem:[%s1386_s0 + $0x368] sm:$0xff] }
  0x47   :  { %459 = vst [vmem:[#allocation2 + $0x180] sm:$0xff] %v402_v32  ;;  %v404_v43 = vmax.f32 %v174_v33, %v347_v34  ;;  %v348_v44 = vmax.f32 %v594_v37, %v651_v40  ;;  %v176_v45 = vmax.f32 %v61_v41, %v538_v42  ;;  %v595_v46 = vld [vmem:[%s1386_s0 + $0x530] sm:$0xff]  ;;  %v652_v47 = vld [vmem:[%s1386_s0 + $0x6f8] sm:$0xff]  ;;  %v62_v48 = vld [vmem:[%s1386_s0 + $0x1a8] sm:$0xff] }
  0x48   :  { %460 = vst [vmem:[#allocation2 + $0x188] sm:$0xff] %v403_v38  ;;  %v349_v49 = vmax.f32 %v595_v46, %v652_v47  ;;  %v539_v50 = vld [vmem:[%s1386_s0 + $0x370] sm:$0xff]  ;;  %v596_v51 = vld [vmem:[%s1386_s0 + $0x538] sm:$0xff]  ;;  %v653_v52 = vld [vmem:[%s1386_s0 + $0x700] sm:$0xff] }
  0x49   :  { %461 = vst [vmem:[#allocation2 + $0x190] sm:$0xff] %v404_v43  ;;  %v405_v53 = vmax.f32 %v175_v39, %v348_v44  ;;  %v177_v54 = vmax.f32 %v62_v48, %v539_v50  ;;  %v350_v55 = vmax.f32 %v596_v51, %v653_v52  ;;  %v63_v56 = vld [vmem:[%s1386_s0 + $0x1b0] sm:$0xff]  ;;  %v540_v57 = vld [vmem:[%s1386_s0 + $0x378] sm:$0xff]  ;;  %v597_v58 = vld [vmem:[%s1386_s0 + $0x540] sm:$0xff] }
  0x4a   :  { %v406_v59 = vmax.f32 %v176_v45, %v349_v49  ;;  %v178_v60 = vmax.f32 %v63_v56, %v540_v57  ;;  %v654_v61 = vld [vmem:[%s1386_s0 + $0x708] sm:$0xff]  ;;  %v64_v62 = vld [vmem:[%s1386_s0 + $0x1b8] sm:$0xff]  ;;  %v541_v63 = vld [vmem:[%s1386_s0 + $0x380] sm:$0xff] }
  0x4b   :  { %462 = vst [vmem:[#allocation2 + $0x198] sm:$0xff] %v405_v53  ;;  %v407_v0 = vmax.f32 %v177_v54, %v350_v55  ;;  %v351_v1 = vmax.f32 %v597_v58, %v654_v61  ;;  %v179_v2 = vmax.f32 %v64_v62, %v541_v63  ;;  %v598_v3 = vld [vmem:[%s1386_s0 + $0x548] sm:$0xff]  ;;  %v655_v4 = vld [vmem:[%s1386_s0 + $0x710] sm:$0xff]  ;;  %v65_v5 = vld [vmem:[%s1386_s0 + $0x1c0] sm:$0x3] }
  0x4c   :  { %463 = vst [vmem:[#allocation2 + $0x1a0] sm:$0xff] %v406_v59  ;;  %v352_v6 = vmax.f32 %v598_v3, %v655_v4  ;;  %v542_v7 = vld [vmem:[%s1386_s0 + $0x388] sm:$0x3]  ;;  %v599_v8 = vld [vmem:[%s1386_s0 + $0x550] sm:$0x3] }
  0x4d   :  { %464 = vst [vmem:[#allocation2 + $0x1a8] sm:$0xff] %v407_v0  ;;  %v408_v9 = vmax.f32 %v178_v60, %v351_v1  ;;  %v180_v10 = vmax.f32 %v65_v5, %v542_v7  ;;  %v656_v11 = vld [vmem:[%s1386_s0 + $0x718] sm:$0x3] }
  0x4e   :  { %6 = vsyncpa [#allocation3], 0  ;;  %v409_v12 = vmax.f32 %v179_v2, %v352_v6  ;;  %v353_v13 = vmax.f32 %v599_v8, %v656_v11  ;;  %s687_s1 = smov 128   ;;  %s688_s3 = smov 8  }
  0x4f   :  { %465 = vst [vmem:[#allocation2 + $0x1b0] sm:$0xff] %v408_v9 }
  0x50   :  { %466 = vst [vmem:[#allocation2 + $0x1b8] sm:$0xff] %v409_v12  ;;  %v410_v14 = vmax.f32 %v180_v10, %v353_v13 }
  0x52   :  { %467 = vst [vmem:[#allocation2 + $0x1c0] sm:$0x3] %v410_v14 }
  0x53   :  { %480 = dma.vmem_to_hbm [thread:$0]  %s473_s29, 7296, %s475_s23, [#allocation3], %s687_s1, %s687_s1, %s688_s3  }
  0x54   :  { %684 = dma.done.wait [#allocation3], 7296  }
  0x55   :  { %685 = vsyncadd [#allocation3], 4294960000 }
  0x56   :  { %485 = vsyncpa [#allocation3], 1 }

</bundles_post_ra>
